<compile_context>
chip_gen: v6e
topology: v6e:2x2x1
jax: 0.10.0
libtpu: 0.0.40
codegen_flags: <defaults>
</compile_context>

<pallas_src>
import functools

import jax
import jax.numpy as jnp
from jax import lax
from jax.experimental import pallas as pl
from jax.experimental.pallas import tpu as pltpu


def _cdiv(a, b):
    return -(-a // b)


def _round_up(a, b):
    return _cdiv(a, b) * b


def _default_n_splits():
    """2 only on chips with 2 TensorCores; single-TC chips gain nothing."""
    try:
        kind = jax.devices()[0].device_kind.lower()
    except Exception:
        return 1
    if "v7" in kind or "7x" in kind or "v4" in kind or "v5p" in kind:
        return 2
    return 1


def _auto_block_n(c, itemsize, per_split):
    """Rows per tile: ~2 MiB logits tiles (HBM-bound streaming), VMEM-safe."""
    target_bytes = 2 << 20
    rows = max(1, target_bytes // (c * itemsize))
    rows = max(256, min(2048, rows))
    # Keep double-buffered tile + f32 working copy well inside v7x's 64 MiB.
    rows_cap = max(16, (8 << 20) // (c * itemsize))
    rows = min(rows, rows_cap)
    rows = min(rows, _round_up(per_split, 16))   # don't over-pad tiny batches
    return _round_up(rows, 16)


def _lga_ce_kernel(logits_ref, targets_ref, out_ref, *, n_total, block_n, n_tiles):
    """One grid step: (block_n, C) logits tile -> masked per-sample CE, reduced
    to a scalar and accumulated into a resident (1, 1) per-split partial sum."""
    s = pl.program_id(0)          # batch split (multi-TC axis)
    i = pl.program_id(1)          # tile within this split (reduction axis)

    @pl.when(i == 0)
    def _():
        out_ref[...] = jnp.zeros_like(out_ref)

    x = logits_ref[...]                                   # (TN, C) native dtype
    t = targets_ref[...]                                  # (TN, 1) int32
    tn, c = x.shape

    # Exact ops stay in the input dtype (bf16 keeps 2x VPU lane width on
    # v6e/v7x): row max and one-hot select/sum are exact for bf16 inputs.
    m = jnp.max(x, axis=-1, keepdims=True)                # (TN, 1)
    col = lax.broadcasted_iota(jnp.int32, (tn, c), 1)
    tgt_logit = jnp.sum(
        jnp.where(col == t, x, jnp.zeros((), x.dtype)), axis=-1, keepdims=True)

    # exp / accumulation path in f32 (matches torch CrossEntropyLoss in f32).
    m32 = m.astype(jnp.float32)
    lse = jnp.log(jnp.sum(jnp.exp(x.astype(jnp.float32) - m32),
                          axis=-1, keepdims=True)) + m32
    per_sample = lse - tgt_logit.astype(jnp.float32)      # (TN, 1) cross-entropy

    # Mask rows past the true batch size (ragged tail / split padding).
    row = lax.broadcasted_iota(jnp.int32, (tn, 1), 0)
    global_row = (s * n_tiles + i) * block_n + row
    per_sample = jnp.where(global_row < n_total, per_sample, 0.0)

    # Per-tile scalar reduction -> (1, 1) resident accumulator for this split.
    out_ref[...] += jnp.sum(per_sample, keepdims=True)


def lga_loss(logits, targets, gamma, *, block_n=None, n_splits=None):
    """LGA loss with a fused cross-entropy (mean reduction) hot path."""
    n, c = logits.shape
    targets2d = targets.astype(jnp.int32).reshape(n, 1)
    itemsize = logits.dtype.itemsize

    if n_splits is None:
        n_splits = _default_n_splits()
    n_splits = max(1, min(n_splits, _cdiv(n, 16)))   # never split tiny batches

    per_split = _cdiv(n, n_splits)
    if block_n is None:
        block_n_eff = _auto_block_n(c, itemsize, per_split)
    else:
        block_n_eff = _round_up(min(block_n, _round_up(per_split, 16)), 16)
    n_tiles = _cdiv(per_split, block_n_eff)
    n_pad = n_splits * n_tiles * block_n_eff

    if n_pad != n:
        logits = jnp.pad(logits, ((0, n_pad - n), (0, 0)))
        targets2d = jnp.pad(targets2d, ((0, n_pad - n), (0, 0)))

    # VMEM budget: double-buffered logits tile + f32 exp-path temporary +
    # slack for targets/accumulator.  Cap at 48 MiB (v7x: 64 MiB physical).
    tile_bytes = block_n_eff * c * itemsize
    work_bytes = block_n_eff * c * 4
    vmem_limit = int(min(48 << 20,
                         max(4 << 20, 2 * tile_bytes + work_bytes + (1 << 20))))

    kernel = functools.partial(
        _lga_ce_kernel, n_total=n, block_n=block_n_eff, n_tiles=n_tiles)

    partial_sums = pl.pallas_call(
        kernel,
        out_shape=jax.ShapeDtypeStruct((n_splits, 1, 1), jnp.float32),
        grid_spec=pltpu.PrefetchScalarGridSpec(
            num_scalar_prefetch=0,
            grid=(n_splits, n_tiles),
            in_specs=[
                pl.BlockSpec((block_n_eff, c), lambda s, i: (s * n_tiles + i, 0)),
                pl.BlockSpec((block_n_eff, 1), lambda s, i: (s * n_tiles + i, 0)),
            ],
            # Per-split (1, 1) scalar partial sum, resident across the
            # reduction axis (no lane-sparse vector accumulator).
            out_specs=pl.BlockSpec((None, 1, 1), lambda s, i: (s, 0, 0)),
        ),
        compiler_params=pltpu.CompilerParams(
            dimension_semantics=("parallel", "arbitrary"),
            vmem_limit_bytes=vmem_limit,
        ),
    )(logits, targets2d)

    # Tiny scalar epilogue in plain JAX (keeps gamma out of the compiled kernel).
    mean_loss = jnp.sum(partial_sums) / n
    return jnp.sign(mean_loss - gamma) * mean_loss


def _reference(logits, targets, gamma):
    """Pure-JAX reference matching torch CrossEntropyLoss(reduction='mean') + LGA."""
    logp = jax.nn.log_softmax(logits.astype(jnp.float32), axis=-1)
    ce = -jnp.take_along_axis(logp, targets[:, None].astype(jnp.int32), axis=-1)
    mean_loss = jnp.mean(ce)
    return jnp.sign(mean_loss - gamma) * mean_loss


if __name__ == "__main__":
    key = jax.random.PRNGKey(0)
    k1, k2, k3, k4 = jax.random.split(key, 4)

    # Small f32 case (module-consistent shapes), auto tiling.
    N, C = 16, 32
    GAMMA = 0.5
    logits = jax.random.normal(k1, (N, C), dtype=jnp.float32)
    targets = jax.random.randint(k2, (N,), 0, C, dtype=jnp.int32)

    out = jax.block_until_ready(lga_loss(logits, targets, GAMMA))
    ref = _reference(logits, targets, GAMMA)
    assert jnp.allclose(out, ref, rtol=1e-5, atol=1e-5), (out, ref)

    # Larger ragged bf16 case with an explicit 2-way split and small tiles:
    # exercises multi-tile accumulation, split/tail masking, and the bf16 path.
    N2, C2 = 1000, 128
    GAMMA2 = 1.5
    logits2 = jax.random.normal(k3, (N2, C2), dtype=jnp.bfloat16)
    targets2 = jax.random.randint(k4, (N2,), 0, C2, dtype=jnp.int32)

    out2 = jax.block_until_ready(
        lga_loss(logits2, targets2, GAMMA2, block_n=256, n_splits=2))
    ref2 = _reference(logits2, targets2, GAMMA2)
    assert jnp.allclose(out2, ref2, rtol=1e-4, atol=1e-4), (out2, ref2)

    # Same bf16 case through the auto (large-tile) path.
    out3 = jax.block_until_ready(lga_loss(logits2, targets2, GAMMA2))
    assert jnp.allclose(out3, ref2, rtol=1e-4, atol=1e-4), (out3, ref2)

    print("KERNEL_OK")
</pallas_src>

<mosaic_0001>
module attributes {stable_mosaic.version = 11 : i64} {
  func.func @_lga_ce_kernel(%arg0: i32, %arg1: i32, %arg2: memref<16x32xf32, #tpu.memory_space<vmem>>, %arg3: memref<16x1xi32, #tpu.memory_space<vmem>>, %arg4: memref<1x1x1xf32, #tpu.memory_space<vmem>>) attributes {dimension_semantics = [#tpu.dimension_semantics<parallel>, #tpu.dimension_semantics<arbitrary>], iteration_bounds = array<i64: 1, 1>, scalar_prefetch = 0 : i64, scratch_operands = 0 : i64, tpu.core_type = #tpu.core_type<tc>, window_params = [{transform_indices = @transform_0, window_bounds = array<i64: 16, 32>}, {transform_indices = @transform_1, window_bounds = array<i64: 16, 1>}, {transform_indices = @transform_2, window_bounds = array<i64: 1, 1, 1>}]} {
    %c0_i32 = arith.constant 0 : i32
    %0 = arith.cmpi eq, %arg1, %c0_i32 : i32
    %1 = arith.extui %0 : i1 to i32
    %c0_i32_0 = arith.constant 0 : i32
    %2 = arith.cmpi ne, %1, %c0_i32_0 : i32
    scf.if %2 {
      %cst_16 = arith.constant 0.000000e+00 : f32
      %43 = vector.broadcast %cst_16 : f32 to vector<1x1xf32>
      %c0_17 = arith.constant 0 : index
      %c0_18 = arith.constant 0 : index
      %c0_19 = arith.constant 0 : index
      %44 = vector.load %arg4[%c0_17, %c0_18, %c0_19] : memref<1x1x1xf32, #tpu.memory_space<vmem>>, vector<1x1x1xf32>
      %45 = vector.shape_cast %44 : vector<1x1x1xf32> to vector<1x1xf32>
      %46 = vector.shape_cast %43 : vector<1x1xf32> to vector<1x1x1xf32>
      tpu.vector_store %arg4[%c0_17, %c0_18, %c0_19], %46 {strides = array<i32>} : memref<1x1x1xf32, #tpu.memory_space<vmem>>, vector<1x1x1xf32>,
    } else {
    }
    %c0 = arith.constant 0 : index
    %c0_1 = arith.constant 0 : index
    %3 = vector.load %arg2[%c0, %c0_1] : memref<16x32xf32, #tpu.memory_space<vmem>>, vector<16x32xf32>
    %c0_2 = arith.constant 0 : index
    %c0_3 = arith.constant 0 : index
    %4 = vector.load %arg3[%c0_2, %c0_3] : memref<16x1xi32, #tpu.memory_space<vmem>>, vector<16x1xi32>
    %cst = arith.constant dense<0xFF800000> : vector<16xf32>
    %5 = vector.multi_reduction <maximumf>, %3, %cst [1] : vector<16x32xf32> to vector<16xf32>
    %6 = vector.shape_cast %5 : vector<16xf32> to vector<16x1xf32>
    %7 = tpu.iota {dimensions = array<i32: 1>} : vector<16x32xi32>
    %8 = vector.broadcast %4 : vector<16x1xi32> to vector<16x32xi32>
    %9 = arith.cmpi eq, %7, %8 : vector<16x32xi32>
    %cst_4 = arith.constant 0.000000e+00 : f32
    %10 = vector.broadcast %cst_4 : f32 to vector<16x32xf32>
    %11 = arith.select %9, %3, %10 : vector<16x32xi1>, vector<16x32xf32>
    %cst_5 = arith.constant dense<0.000000e+00> : vector<16xf32>
    %12 = vector.multi_reduction <add>, %11, %cst_5 [1] : vector<16x32xf32> to vector<16xf32>
    %13 = vector.shape_cast %12 : vector<16xf32> to vector<16x1xf32>
    %14 = vector.broadcast %6 : vector<16x1xf32> to vector<16x32xf32>
    %15 = arith.subf %3, %14 : vector<16x32xf32>
    %16 = math.exp %15 : vector<16x32xf32>
    %cst_6 = arith.constant dense<0.000000e+00> : vector<16xf32>
    %17 = vector.multi_reduction <add>, %16, %cst_6 [1] : vector<16x32xf32> to vector<16xf32>
    %18 = vector.shape_cast %17 : vector<16xf32> to vector<16x1xf32>
    %19 = math.log %18 : vector<16x1xf32>
    %20 = arith.addf %19, %6 : vector<16x1xf32>
    %21 = arith.subf %20, %13 : vector<16x1xf32>
    %22 = tpu.iota {dimensions = array<i32: 0>} : vector<16x1xi32>
    %c1_i32 = arith.constant 1 : i32
    %23 = arith.muli %arg0, %c1_i32 : i32
    %24 = arith.addi %23, %arg1 : i32
    %c16_i32 = arith.constant 16 : i32
    %25 = arith.muli %24, %c16_i32 : i32
    %26 = vector.broadcast %25 : i32 to vector<16x1xi32>
    %27 = arith.addi %26, %22 : vector<16x1xi32>
    %c16_i32_7 = arith.constant 16 : i32
    %28 = vector.broadcast %c16_i32_7 : i32 to vector<16x1xi32>
    %29 = arith.cmpi slt, %27, %28 : vector<16x1xi32>
    %cst_8 = arith.constant 0.000000e+00 : f32
    %30 = vector.broadcast %cst_8 : f32 to vector<16x1xf32>
    %31 = arith.select %29, %21, %30 : vector<16x1xi1>, vector<16x1xf32>
    %c0_9 = arith.constant 0 : index
    %c0_10 = arith.constant 0 : index
    %c0_11 = arith.constant 0 : index
    %32 = vector.load %arg4[%c0_9, %c0_10, %c0_11] : memref<1x1x1xf32, #tpu.memory_space<vmem>>, vector<1x1x1xf32>
    %33 = vector.shape_cast %32 : vector<1x1x1xf32> to vector<1x1xf32>
    %34 = vector.shape_cast %31 : vector<16x1xf32> to vector<1x16x1xf32>
    %cst_12 = arith.constant dense<0.000000e+00> : vector<1xf32>
    %35 = vector.multi_reduction <add>, %34, %cst_12 [1, 2] : vector<1x16x1xf32> to vector<1xf32>
    %36 = vector.shape_cast %35 : vector<1xf32> to vector<1x1x1xf32>
    %37 = vector.extract %36[0, 0, 0] : f32 from vector<1x1x1xf32>
    %38 = vector.broadcast %37 : f32 to vector<1x1xf32>
    %39 = arith.addf %33, %38 : vector<1x1xf32>
    %c0_13 = arith.constant 0 : index
    %c0_14 = arith.constant 0 : index
    %c0_15 = arith.constant 0 : index
    %40 = vector.load %arg4[%c0_13, %c0_14, %c0_15] : memref<1x1x1xf32, #tpu.memory_space<vmem>>, vector<1x1x1xf32>
    %41 = vector.shape_cast %40 : vector<1x1x1xf32> to vector<1x1xf32>
    %42 = vector.shape_cast %39 : vector<1x1xf32> to vector<1x1x1xf32>
    tpu.vector_store %arg4[%c0_13, %c0_14, %c0_15], %42 {strides = array<i32>} : memref<1x1x1xf32, #tpu.memory_space<vmem>>, vector<1x1x1xf32>,
    return
  }
  func.func @transform_0(%arg0: i32, %arg1: i32) -> (i32, i32) {
    %c1_i32 = arith.constant 1 : i32
    %0 = arith.muli %arg0, %c1_i32 : i32
    %1 = arith.addi %0, %arg1 : i32
    %c0_i32 = arith.constant 0 : i32
    %c0_i32_0 = arith.constant 0 : i32
    return %1, %c0_i32 : i32, i32
  }
  func.func @transform_1(%arg0: i32, %arg1: i32) -> (i32, i32) {
    %c1_i32 = arith.constant 1 : i32
    %0 = arith.muli %arg0, %c1_i32 : i32
    %1 = arith.addi %0, %arg1 : i32
    %c0_i32 = arith.constant 0 : i32
    %c0_i32_0 = arith.constant 0 : i32
    return %1, %c0_i32 : i32, i32
  }
  func.func @transform_2(%arg0: i32, %arg1: i32) -> (i32, i32, i32) {
    %c0_i32 = arith.constant 0 : i32
    %c0_i32_0 = arith.constant 0 : i32
    %c0_i32_1 = arith.constant 0 : i32
    return %arg0, %c0_i32, %c0_i32_0 : i32, i32, i32
  }
}

</mosaic_0001>

<bundles_post_ra>
// kernel: tpu_custom_call.1
= control target key start
LH: loop header
LB: loop body
LE: loop exit
PB: predicated region body
PF: predicated region fallthrough
CT: control target
= control target key end

     0   :  { %vm66_vm0 = vcmask 261120   ;;  %v204_v4 = vmov 0   ;;  %s245_s0 = inlined_call_operand.vmem [shape: f32[16,32], index: 0, kind: input, shape index: {}]   ;;  %s246_s1 = inlined_call_operand.vmem [shape: s32[16,1], index: 1, kind: input, shape index: {}]   ;;  %s247_s2 = inlined_call_operand.hbm [shape: f32[1,1,1], index: 2, kind: output, shape index: {}]  }
   0x1   :  { %v62_v0 = vld [vmem:[%s245_s0] sm:$0xff]  ;;  %v63_v1 = vld [vmem:[%s245_s0 + $0x8] sm:$0xff]  ;;  %172 = vset.pattern.permute.xlu1 %v204_v4  ;;  %173 = vset.pattern.permute.xlu0 %v204_v4 }
   0x2   :  { %v64_v2 = vld [vmem:[%s246_s1] sm:$0xff]  ;;  %v67_v3 = vsel %vm66_vm0, %v62_v0, -inf }
   0x3   :  { %7 = vsyncpa [#allocation3], 0  ;;  %68 = vmax.xlane.f32.xlu0 %v67_v3  ;;  %76 = vperm.xlu1 %172, %v64_v2   ;;  %v70_v5 = vsel %vm66_vm0, %v63_v1, -inf  ;;  %v65_v6 = vld [vmem:[%s246_s1 + $0x8] sm:$0xff]  ;;  %v73_v13 = vlaneseq  ;;  %vm124_vm3 = vcmask 7168   ;;  %vm60_vm4 = vcmask 0  }
   0x4   :  { %v205_v40 = vmov 0.0   ;;  %s206_s0 = smov [#allocation2]  }
   0x5   :  { %v74_v15 = vand.u32 127, %v73_v13  ;;  %61 = vst.msk [vmem:[#allocation2] sm:$0x1] %vm60_vm4, %v205_v40  ;;  %s147_s1 = sshll.u32 %s206_s0, 4  ;;  %s148_s1 = int_to_ptr.vmem [resolvable:$true] %s147_s1 }
   0x6   :  { %s182_s18 = scalar_lea.vmem %s148_s1, 16  ;;  %s186_s19 = scalar_lea.vmem %s148_s1, 32 }
   0x7   :  { %71 = vmax.xlane.f32.xlu0 %v70_v5  ;;  %79 = vperm.xlu1 %172, %v65_v6   ;;  %p183_p0 = scmp.ne.s32.totalorder %s148_s1, %s182_s18  ;;  %p187_p1 = scmp.lt.s32.totalorder %s148_s1, %s148_s1 }
   0x8   :  { %p188_p2 = scmp.lt.s32.totalorder %s186_s19, %s182_s18 }
   0xa   :  { %p189_p3 = por %p188_p2, %p187_p1 }
   0xc   :  { %v123_v48 = vld [vmem:[#allocation2] sm:$0x1]  ;;  %p190_p4 = pnand %p189_p3, %p183_p0 }
  0x7e   :  { %v77_v14 = vpop.permute.xlu1 %76 }
  0x7f   :  { %vm81_vm1 = vcmp.eq.s32.totalorder %v74_v15, %v77_v14 }
  0x80   :  { %v83_v18 = vsel %vm81_vm1, %v62_v0, 0.0 }
  0x81   :  { %v85_v20 = vsel %vm66_vm0, %v83_v18, 0.0 }
  0x82   :  { %v80_v16 = vpop.permute.xlu1 %79 }
  0x83   :  { %vm82_vm2 = vcmp.eq.s32.totalorder %v74_v15, %v80_v16 }
  0x84   :  { %v84_v22 = vsel %vm82_vm2, %v63_v1, 0.0 }
  0x85   :  { %v88_v24 = vsel %vm66_vm0, %v84_v22, 0.0 }
  0x8c   :  { %v69_v7 = vpop.xlane.xlu0 %68 }
  0x8d   :  { %v91_v8 = vsub.f32 %v62_v0, %v69_v7 }
  0x8f   :  { %v93_v9 = vmul.f32 1.442695, %v91_v8 }
  0x90   :  { %v72_v10 = vpop.xlane.xlu0 %71 }
  0x91   :  { %174 = vpow2.f32 %v93_v9  ;;  %v92_v11 = vsub.f32 %v63_v1, %v72_v10 }
  0x93   :  { %v95_v12 = vmul.f32 1.442695, %v92_v11 }
  0x95   :  { %176 = vpow2.f32 %v95_v12 }
  0x9e   :  { %v175_v17 = vpop.eup %174 }
  0x9f   :  { %v97_v19 = vsel %vm66_vm0, %v175_v17, 0.0 }
  0xa0   :  { %98 = vadd.xlane.f32.xlu0 %v97_v19 }
  0xa2   :  { %v177_v21 = vpop.eup %176 }
  0xa3   :  { %v100_v23 = vsel %vm66_vm0, %v177_v21, 0.0 }
  0xa4   :  { %101 = vadd.xlane.f32.xlu1 %v100_v23  ;;  %86 = vadd.xlane.f32.xlu0 %v85_v20 }
  0xa8   :  { %89 = vadd.xlane.f32.xlu0 %v88_v24 }
 0x129   :  { %v99_v25 = vpop.xlane.xlu0 %98 }
 0x12a   :  { %178 = vlog2.f32 %v99_v25 }
 0x12d   :  { %v102_v26 = vpop.xlane.xlu1 %101  ;;  %v87_v29 = vpop.xlane.xlu0 %86 }
 0x12e   :  { %180 = vlog2.f32 %v102_v26 }
 0x131   :  { %v90_v35 = vpop.xlane.xlu0 %89 }
 0x137   :  { %v179_v27 = vpop.eup %178 }
 0x138   :  { %v104_v28 = vmul.f32 0.6931472, %v179_v27 }
 0x13a   :  { %v107_v30 = vadd.f32 %v104_v28, %v69_v7 }
 0x13b   :  { %v181_v31 = vpop.eup %180 }
 0x13c   :  { %v106_v32 = vmul.f32 0.6931472, %v181_v31  ;;  %v109_v33 = vsub.f32 %v107_v30, %v87_v29 }
 0x13e   :  { %v108_v34 = vadd.f32 %v106_v32, %v72_v10  ;;  %v125_v37 = vsel %vm124_vm3, %v109_v33, 0.0 }
 0x140   :  { %v110_v36 = vsub.f32 %v108_v34, %v90_v35 }
 0x142   :  { %v126_v38 = vsel %vm124_vm3, %v110_v36, 0.0 }
 0x143   :  { %v127_v39 = vadd.f32 %v126_v38, %v125_v37 }
 0x145   :  { %128 = vadd.xlane.f32.xlu0 %v127_v39 }
 0x1ce   :  { %v129_v41 = vpop.xlane.xlu0 %128 }
 0x1cf   :  { %v130_v42 = vrot.slane %v129_v41, 4 }
 0x1d1   :  { %v131_v43 = vadd.f32 %v130_v42, %v129_v41 }
 0x1d3   :  { %v132_v44 = vrot.slane %v131_v43, 2 }
 0x1d5   :  { %v133_v45 = vadd.f32 %v132_v44, %v131_v43 }
 0x1d7   :  { %v134_v46 = vrot.slane %v133_v45, 1 }
 0x1d9   :  { %v135_v47 = vadd.f32 %v134_v46, %v133_v45 }
 0x1db   :  { %167 = vpush %v135_v47 }
 0x20c   :  { %s168_s17 = spop %167 }
 0x20d   :  { %v137_v49 = vstv %s168_s17 }
 0x20e   :  { %v138_v50 = vadd.f32 %v137_v49, %v123_v48 }
 0x210   :  { %140 = vst.msk [vmem:[#allocation2] sm:$0x1] %vm60_vm4, %v138_v50 }
 0x211   :  { %193 = shalt.err (!%p190_p4)
}
 0x212   :  { %150 = dma.vmem_to_hbm [thread:$0]  %s148_s1, 16, %s247_s2, [#allocation3]  }
 0x213   :  { %202 = dma.done.wait [#allocation3], 16  }
 0x214   :  { %203 = vsyncadd [#allocation3], 4294967280 }
 0x215   :  { %154 = vsyncpa [#allocation3], 1 }

</bundles_post_ra>
